<compile_context>
chip_gen: v6e
topology: v6e:2x2x1
jax: 0.10.0
libtpu: 0.0.40
codegen_flags: <defaults>
</compile_context>

<pallas_src>
import functools

import jax
import jax.numpy as jnp
from jax.experimental import pallas as pl
from jax.experimental.pallas import tpu as pltpu


# MXU operand dtype.  bf16 per the perf review (DMA/VMEM halved, native MXU
# rate on v6e/v7x).  Accumulation and epilogues are always f32.  Flip back to
# jnp.float32 for bit-closer parity with the f32 PyTorch reference.
MXU_DTYPE = jnp.bfloat16

LN_EPS = 1e-5


def _vmem():
    return pl.BlockSpec(memory_space=pltpu.MemorySpace.VMEM)


def _layer_norm(y, gamma, beta):
    mu = jnp.mean(y, axis=-1, keepdims=True)
    var = jnp.mean(jnp.square(y - mu), axis=-1, keepdims=True)
    return (y - mu) * jax.lax.rsqrt(var + LN_EPS) * gamma + beta


# ------------------ kernel 1: per-dim GCN chain + pooling -------------------

def _gcn_dim_kernel(*refs, n_layers):
    """One grid step == one edge-type dimension d (a "parallel" grid axis).

    Runs the whole n_layers GCN chain for dim d on 2-D (N, dh) slabs, pools
    each layer right after it is produced, and accumulates
    pooled @ W_graph[d, l] into a per-dim partial (B, dge) graph embedding.
    Only one (N, N) Â slab is resident at a time.
    """
    a_ref, x_ref, maskt_ref = refs[:3]
    layer_refs = refs[3:3 + 3 * n_layers]
    out_ref = refs[3 + 3 * n_layers]

    a = a_ref[0]                        # (N, N)  bf16 normalized adjacency, this dim
    mask_t = maskt_ref[...]             # (N, B)  f32 graph-membership 0/1
    n_graphs = mask_t.shape[1]
    dge = layer_refs[2].shape[-1]

    h_mxu = x_ref[...]                  # (N, F_in) already in MXU dtype
    acc = jnp.zeros((n_graphs, dge), jnp.float32)

    for layer in range(n_layers):
        w = layer_refs[3 * layer][0]        # (din, dh)  bf16
        b = layer_refs[3 * layer + 1][0]    # (1, dh)    f32
        wg_l = layer_refs[3 * layer + 2][0]  # (dh, dge) bf16  (graph_block row block)

        # GCNConv: Â @ (h @ W) + b, f32 accumulation, f32 ReLU epilogue.
        xw = jnp.dot(h_mxu, w, preferred_element_type=jnp.float32)
        y = jnp.dot(a, xw.astype(MXU_DTYPE),
                    preferred_element_type=jnp.float32) + b
        h = jnp.maximum(y, 0.0)                                 # (N, dh) f32
        h_mxu = h.astype(MXU_DTYPE)

        # global_max_pool fused right here (no h_layers list).  Static loop
        # over the (small) batch keeps everything 2-D — no (B, N, dh)
        # broadcast.  h >= 0 after ReLU, so a 0-fill masked max equals the
        # true max over member nodes and an empty graph yields 0 (no -inf).
        rows = []
        for g_idx in range(n_graphs):
            member = mask_t[:, g_idx:g_idx + 1] > 0.0           # (N, 1)
            rows.append(jnp.max(jnp.where(member, h, 0.0),
                                axis=0, keepdims=True))         # (1, dh)
        pooled = jnp.concatenate(rows, axis=0)                  # (B, dh)
        # TODO(synk): for large B, switch to a segment-max over the sorted
        # contiguous `batch` node ranges instead of a per-graph masked reduce.

        acc = acc + jnp.dot(pooled.astype(MXU_DTYPE), wg_l,
                            preferred_element_type=jnp.float32)

    out_ref[0] = acc                    # per-dim partial graph embedding


# ------------------------ kernel 2: dense head stack ------------------------

def _head_kernel(gpart_ref, bg_ref, gg_ref, betag_ref,
                 pi_ref, wp_ref, bp_ref, gp_ref, betap_ref,
                 wfg_ref, wfp_ref, bf_ref, gf_ref, betaf_ref,
                 out_ref, *, n_classes):
    # graph_block: sum per-dim partials + bias, LayerNorm, Dropout(id), ReLU.
    g_pre = jnp.sum(gpart_ref[...], axis=0) + bg_ref[...]       # (B, dge) f32
    g = jnp.maximum(_layer_norm(g_pre, gg_ref[...], betag_ref[...]), 0.0)

    # pi_block: Linear + LayerNorm + Dropout(id) + ReLU.
    p_pre = jnp.dot(pi_ref[...], wp_ref[...],
                    preferred_element_type=jnp.float32) + bp_ref[...]
    p = jnp.maximum(_layer_norm(p_pre, gp_ref[...], betap_ref[...]), 0.0)

    # fc_block on concat([g, p]) via split row-blocks of W_fc (no lane
    # concat).  The fc weight/bias/gamma/beta are zero-padded to a lane-dense
    # width, so the padded columns are exactly 0; LayerNorm statistics are
    # taken over the real n_classes columns only, and the final store is a
    # full-lane (unmasked) store.
    out_pre = (jnp.dot(g.astype(MXU_DTYPE), wfg_ref[...],
                       preferred_element_type=jnp.float32)
               + jnp.dot(p.astype(MXU_DTYPE), wfp_ref[...],
                         preferred_element_type=jnp.float32)
               + bf_ref[...])                                   # (B, C_pad) f32
    c_pad = out_pre.shape[-1]
    col = jax.lax.broadcasted_iota(jnp.int32, (1, c_pad), 1)
    real = (col < n_classes).astype(jnp.float32)
    mu = jnp.sum(out_pre, axis=-1, keepdims=True) / n_classes   # pad cols are 0
    cent = (out_pre - mu) * real
    var = jnp.sum(cent * cent, axis=-1, keepdims=True) / n_classes
    # gamma/beta are 0 in padded columns -> padded output stays 0.
    out_ref[...] = ((out_pre - mu) * jax.lax.rsqrt(var + LN_EPS)
                    * gf_ref[...] + betaf_ref[...])


# ------------------------------- glue (JAX) ---------------------------------

def build_norm_adj_stack(edge_index, edge_type, n_nodes):
    """Dense GCN-normalized adjacency per edge-type dimension: (n_dims, N, N).

    Replaces torch.argwhere dynamic edge selection with masked edge weights
    (masked-out edges contribute weight 0).  Duplicate edges accumulate,
    matching PyG add-aggregation + gcn_norm."""
    src = edge_index[0]
    dst = edge_index[1]
    n_dims = edge_type.shape[1]
    w = (edge_type == 1).astype(jnp.float32).T                  # (d, E)
    a = jnp.zeros((n_dims, n_nodes, n_nodes), jnp.float32)
    a = a.at[jnp.arange(n_dims)[:, None], dst[None, :], src[None, :]].add(w)
    a = a + jnp.eye(n_nodes, dtype=jnp.float32)[None]           # self loops
    deg = jnp.sum(a, axis=2)                                    # (d, N)
    dinv = jnp.where(deg > 0, jax.lax.rsqrt(deg), 0.0)
    return dinv[:, :, None] * a * dinv[:, None, :]


def init_params(key, cfg):
    keys = iter(jax.random.split(key, 64))
    params = {}

    conv = []
    for _ in range(cfg["n_dims"]):
        block = []
        for layer_idx in range(cfg["n_graph_layers"]):
            din = cfg["dim_node_feat"] if layer_idx == 0 else cfg["dim_node_hidden"]
            w = 0.1 * jax.random.normal(next(keys), (din, cfg["dim_node_hidden"]),
                                        jnp.float32)
            b = 0.01 * jax.random.normal(next(keys), (1, cfg["dim_node_hidden"]),
                                         jnp.float32)
            block.append((w, b))
        conv.append(block)
    params["conv"] = conv

    def lin_ln(din, dout):
        w = 0.1 * jax.random.normal(next(keys), (din, dout), jnp.float32)
        b = 0.01 * jax.random.normal(next(keys), (1, dout), jnp.float32)
        gamma = jnp.ones((1, dout), jnp.float32)
        beta = jnp.zeros((1, dout), jnp.float32)
        return (w, b, gamma, beta)

    d_jk = cfg["n_dims"] * cfg["n_graph_layers"] * cfg["dim_node_hidden"]
    params["graph_block"] = lin_ln(d_jk, cfg["dim_graph_embedding"])
    params["pi_block"] = lin_ln(cfg["dim_pers_feat"], cfg["dim_pers_embedding"])
    d_fc_in = cfg["dim_graph_embedding"] + cfg["dim_pers_embedding"]
    params["fc"] = lin_ln(d_fc_in, cfg["n_classes"])   # dim_hidden_ls=None -> one layer
    return params


def multigcn_forward(params, x, edge_index, edge_type, batch, pi, *, n_graphs):
    n_nodes, dim_feat = x.shape
    n_dims = len(params["conv"])
    n_layers = len(params["conv"][0])
    dh = params["conv"][0][0][0].shape[1]

    # ---- JAX glue: scatter-built Â + graph-membership mask ------------------
    a_stack = build_norm_adj_stack(edge_index, edge_type, n_nodes).astype(MXU_DTYPE)
    mask_t = (batch[:, None] == jnp.arange(n_graphs)[None, :]).astype(jnp.float32)

    # ---- pre-cast all large MXU operands to bf16 in the wrapper -------------
    x_mxu = x.astype(MXU_DTYPE)
    pi_mxu = pi.astype(MXU_DTYPE)

    wg, bg, gg, betag = params["graph_block"]
    dge = wg.shape[1]
    # jk concat order in the reference is dim-major / layer-minor:
    # column block (dim, layer) lives at rows [(dim*L+layer)*dh : +dh].
    wg_r = wg.reshape(n_dims, n_layers, dh, dge).astype(MXU_DTYPE)

    conv_inputs, conv_specs = [], []
    for layer in range(n_layers):
        w_l = jnp.stack([params["conv"][d][layer][0] for d in range(n_dims)],
                        axis=0).astype(MXU_DTYPE)                # (d, din, dh)
        b_l = jnp.stack([params["conv"][d][layer][1] for d in range(n_dims)],
                        axis=0)                                  # (d, 1, dh) f32
        wg_l = wg_r[:, layer]                                    # (d, dh, dge)
        conv_inputs += [w_l, b_l, wg_l]
        din = w_l.shape[1]
        conv_specs += [pl.BlockSpec((1, din, dh), lambda d: (d, 0, 0)),
                       pl.BlockSpec((1, 1, dh), lambda d: (d, 0, 0)),
                       pl.BlockSpec((1, dh, dge), lambda d: (d, 0, 0))]

    wp, bp, gp, betap = params["pi_block"]
    wf, bf, gf, betaf = params["fc"]
    n_classes = wf.shape[1]
    # Lane-dense head output: pad the class dim of W_fc/bias/gamma/beta to a
    # 128-multiple with zeros (padded output columns come out exactly 0).
    c_pad = max(128, ((n_classes + 127) // 128) * 128)
    pad_c = c_pad - n_classes
    wf_g = jnp.pad(wf[:dge], ((0, 0), (0, pad_c))).astype(MXU_DTYPE)
    wf_p = jnp.pad(wf[dge:], ((0, 0), (0, pad_c))).astype(MXU_DTYPE)
    bf_pad = jnp.pad(bf, ((0, 0), (0, pad_c)))
    gf_pad = jnp.pad(gf, ((0, 0), (0, pad_c)))
    betaf_pad = jnp.pad(betaf, ((0, 0), (0, pad_c)))

    # ---------------- kernel 1: per-dim GCN chains (parallel grid) ----------
    gcn = functools.partial(_gcn_dim_kernel, n_layers=n_layers)
    g_partial = pl.pallas_call(
        gcn,
        out_shape=jax.ShapeDtypeStruct((n_dims, n_graphs, dge), jnp.float32),
        grid_spec=pltpu.PrefetchScalarGridSpec(
            num_scalar_prefetch=0,
            grid=(n_dims,),
            in_specs=[pl.BlockSpec((1, n_nodes, n_nodes), lambda d: (d, 0, 0)),
                      pl.BlockSpec((n_nodes, dim_feat), lambda d: (0, 0)),
                      pl.BlockSpec((n_nodes, n_graphs), lambda d: (0, 0))]
                     + conv_specs,
            out_specs=pl.BlockSpec((1, n_graphs, dge), lambda d: (d, 0, 0)),
        ),
        compiler_params=pltpu.CompilerParams(
            # "parallel" lets Mosaic shard the independent per-dim chains
            # across the two TensorCores on v7x; sequential elsewhere.
            dimension_semantics=("parallel",),
            vmem_limit_bytes=64 * 1024 * 1024,
        ),
    )(a_stack, x_mxu, mask_t, *conv_inputs)
    # TODO(synk): when N (nodes) scales past ~2K, additionally tile the Â
    # matmul over node-row tiles and the N contraction (f32 VMEM accumulator,
    # contraction axis "arbitrary") — one (N, N) bf16 slab per dim still hits
    # the VMEM ceiling eventually.

    # ------------------------- kernel 2: dense heads ------------------------
    head = functools.partial(_head_kernel, n_classes=n_classes)
    head_inputs = [g_partial, bg, gg, betag,
                   pi_mxu, wp.astype(MXU_DTYPE), bp, gp, betap,
                   wf_g, wf_p, bf_pad, gf_pad, betaf_pad]
    out_pad = pl.pallas_call(
        head,
        out_shape=jax.ShapeDtypeStruct((n_graphs, c_pad), jnp.float32),
        in_specs=[_vmem()] * len(head_inputs),
        out_specs=_vmem(),
    )(*head_inputs)
    return out_pad[:, :n_classes]


# --------------------------------- main --------------------------------------

if __name__ == "__main__":
    cfg = dict(
        n_dims=2,
        dim_node_feat=8,
        dim_pers_feat=16,
        n_classes=4,
        dim_node_hidden=16,
        dim_pers_embedding=16,
        dim_graph_embedding=32,
        dropout_rate=0.1,          # identity at inference
        n_graph_layers=2,
    )

    N_NODES = 32
    N_GRAPHS = 4
    N_EDGES = 64

    root = jax.random.PRNGKey(0)
    k_x, k_src, k_dst, k_et, k_pi, k_par = jax.random.split(root, 6)

    x = jax.random.normal(k_x, (N_NODES, cfg["dim_node_feat"]), jnp.float32)
    src = jax.random.randint(k_src, (N_EDGES,), 0, N_NODES)
    dst = jax.random.randint(k_dst, (N_EDGES,), 0, N_NODES)
    edge_index = jnp.stack([src, dst], axis=0)                        # (2, E)
    edge_type = (jax.random.uniform(k_et, (N_EDGES, cfg["n_dims"])) < 0.6
                 ).astype(jnp.int32)                                  # (E, n_dims)
    batch = jnp.repeat(jnp.arange(N_GRAPHS, dtype=jnp.int32),
                       N_NODES // N_GRAPHS)                           # (N,) sorted
    pi = jax.random.normal(k_pi, (N_GRAPHS, cfg["dim_pers_feat"]), jnp.float32)

    params = init_params(k_par, cfg)

    fwd = jax.jit(multigcn_forward, static_argnames=("n_graphs",))
    out = fwd(params, x, edge_index, edge_type, batch, pi, n_graphs=N_GRAPHS)
    out = jax.block_until_ready(out)
    assert out.shape == (N_GRAPHS, cfg["n_classes"])
    assert bool(jnp.all(jnp.isfinite(out)))
    print("KERNEL_OK")
</pallas_src>

<mosaic_0001>
module attributes {stable_mosaic.version = 11 : i64} {
  func.func private @main(%arg0: i32) attributes {dimension_semantics = [#tpu.dimension_semantics<core_parallel>], iteration_bounds = array<i64: 2>, tpu.core_type = #tpu.core_type<sc_scalar_subcore>, window_params = []} {
    return
  }
}

module attributes {stable_mosaic.version = 11 : i64} {
  func.func private @main(%arg0: i32) attributes {dimension_semantics = [#tpu.dimension_semantics<core_parallel>], iteration_bounds = array<i64: 2>, tpu.core_type = #tpu.core_type<sc_scalar_subcore>, window_params = []} {
    return
  }
}

module attributes {stable_mosaic.version = 11 : i64} {
  func.func @_gcn_dim_kernel(%arg0: i32, %arg1: memref<1x32x32xbf16, #tpu.memory_space<vmem>>, %arg2: memref<32x8xbf16, #tpu.memory_space<vmem>>, %arg3: memref<32x4xf32, #tpu.memory_space<vmem>>, %arg4: memref<1x8x16xbf16, #tpu.memory_space<vmem>>, %arg5: memref<1x1x16xf32, #tpu.memory_space<vmem>>, %arg6: memref<1x16x32xbf16, #tpu.memory_space<vmem>>, %arg7: memref<1x16x16xbf16, #tpu.memory_space<vmem>>, %arg8: memref<1x1x16xf32, #tpu.memory_space<vmem>>, %arg9: memref<1x16x32xbf16, #tpu.memory_space<vmem>>, %arg10: memref<1x4x32xf32, #tpu.memory_space<vmem>>) attributes {dimension_semantics = [#tpu.dimension_semantics<parallel>], iteration_bounds = array<i64: 2>, scalar_prefetch = 0 : i64, scratch_operands = 0 : i64, tpu.core_type = #tpu.core_type<tc>, window_params = [{transform_indices = @transform_0, window_bounds = array<i64: 1, 32, 32>}, {pipeline_mode = #tpu.pipeline_mode<synchronous>, transform_indices = @transform_1, window_bounds = array<i64: 32, 8>}, {pipeline_mode = #tpu.pipeline_mode<synchronous>, transform_indices = @transform_2, window_bounds = array<i64: 32, 4>}, {transform_indices = @transform_3, window_bounds = array<i64: 1, 8, 16>}, {transform_indices = @transform_4, window_bounds = array<i64: 1, 1, 16>}, {transform_indices = @transform_5, window_bounds = array<i64: 1, 16, 32>}, {transform_indices = @transform_6, window_bounds = array<i64: 1, 16, 16>}, {transform_indices = @transform_7, window_bounds = array<i64: 1, 1, 16>}, {transform_indices = @transform_8, window_bounds = array<i64: 1, 16, 32>}, {transform_indices = @transform_9, window_bounds = array<i64: 1, 4, 32>}]} {
    %c0 = arith.constant 0 : index
    %c0_0 = arith.constant 0 : index
    %c0_1 = arith.constant 0 : index
    %0 = vector.load %arg1[%c0, %c0_0, %c0_1] : memref<1x32x32xbf16, #tpu.memory_space<vmem>>, vector<1x32x32xbf16>
    %1 = vector.shape_cast %0 : vector<1x32x32xbf16> to vector<32x32xbf16>
    %c0_2 = arith.constant 0 : index
    %c0_3 = arith.constant 0 : index
    %2 = vector.load %arg3[%c0_2, %c0_3] : memref<32x4xf32, #tpu.memory_space<vmem>>, vector<32x4xf32>
    %c0_4 = arith.constant 0 : index
    %c0_5 = arith.constant 0 : index
    %3 = vector.load %arg2[%c0_4, %c0_5] : memref<32x8xbf16, #tpu.memory_space<vmem>>, vector<32x8xbf16>
    %cst = arith.constant 0.000000e+00 : f32
    %4 = vector.broadcast %cst : f32 to vector<4x32xf32>
    %c0_6 = arith.constant 0 : index
    %c0_7 = arith.constant 0 : index
    %c0_8 = arith.constant 0 : index
    %5 = vector.load %arg4[%c0_6, %c0_7, %c0_8] : memref<1x8x16xbf16, #tpu.memory_space<vmem>>, vector<1x8x16xbf16>
    %6 = vector.shape_cast %5 : vector<1x8x16xbf16> to vector<8x16xbf16>
    %c0_9 = arith.constant 0 : index
    %c0_10 = arith.constant 0 : index
    %c0_11 = arith.constant 0 : index
    %7 = vector.load %arg5[%c0_9, %c0_10, %c0_11] : memref<1x1x16xf32, #tpu.memory_space<vmem>>, vector<1x1x16xf32>
    %8 = vector.shape_cast %7 : vector<1x1x16xf32> to vector<1x16xf32>
    %c0_12 = arith.constant 0 : index
    %c0_13 = arith.constant 0 : index
    %c0_14 = arith.constant 0 : index
    %9 = vector.load %arg6[%c0_12, %c0_13, %c0_14] : memref<1x16x32xbf16, #tpu.memory_space<vmem>>, vector<1x16x32xbf16>
    %10 = vector.shape_cast %9 : vector<1x16x32xbf16> to vector<16x32xbf16>
    %cst_15 = arith.constant dense<0.000000e+00> : vector<32x16xf32>
    %11 = tpu.matmul %3, %6, %cst_15 {dimension_numbers = #tpu.dot_dimension_numbers<[1], [0], [0], [1], [0, 0, 1, 1], [], []>} : vector<32x8xbf16>, vector<8x16xbf16>, vector<32x16xf32> -> vector<32x16xf32>
    %12 = arith.truncf %11 : vector<32x16xf32> to vector<32x16xbf16>
    %cst_16 = arith.constant dense<0.000000e+00> : vector<32x16xf32>
    %13 = tpu.matmul %1, %12, %cst_16 {dimension_numbers = #tpu.dot_dimension_numbers<[1], [0], [0], [1], [0, 0, 1, 1], [], []>} : vector<32x32xbf16>, vector<32x16xbf16>, vector<32x16xf32> -> vector<32x16xf32>
    %14 = vector.broadcast %8 : vector<1x16xf32> to vector<32x16xf32>
    %15 = arith.addf %13, %14 : vector<32x16xf32>
    %cst_17 = arith.constant 0.000000e+00 : f32
    %16 = vector.broadcast %cst_17 : f32 to vector<32x16xf32>
    %17 = arith.maximumf %15, %16 : vector<32x16xf32>
    %18 = arith.truncf %17 : vector<32x16xf32> to vector<32x16xbf16>
    %19 = vector.extract_strided_slice %2 {offsets = [0, 0], sizes = [32, 1], strides = [1, 1]} : vector<32x4xf32> to vector<32x1xf32>
    %cst_18 = arith.constant 0.000000e+00 : f32
    %20 = vector.broadcast %cst_18 : f32 to vector<32x1xf32>
    %21 = arith.cmpf ogt, %19, %20 : vector<32x1xf32>
    %cst_19 = arith.constant 0.000000e+00 : f32
    %22 = vector.shape_cast %21 : vector<32x1xi1> to vector<32x1xi1>
    %23 = vector.broadcast %22 : vector<32x1xi1> to vector<32x16xi1>
    %24 = vector.broadcast %cst_19 : f32 to vector<32x16xf32>
    %25 = arith.select %23, %17, %24 : vector<32x16xi1>, vector<32x16xf32>
    %cst_20 = arith.constant dense<0xFF800000> : vector<16xf32>
    %26 = vector.multi_reduction <maximumf>, %25, %cst_20 [0] : vector<32x16xf32> to vector<16xf32>
    %27 = vector.shape_cast %26 : vector<16xf32> to vector<1x16xf32>
    %28 = vector.extract_strided_slice %2 {offsets = [0, 1], sizes = [32, 1], strides = [1, 1]} : vector<32x4xf32> to vector<32x1xf32>
    %cst_21 = arith.constant 0.000000e+00 : f32
    %29 = vector.broadcast %cst_21 : f32 to vector<32x1xf32>
    %30 = arith.cmpf ogt, %28, %29 : vector<32x1xf32>
    %cst_22 = arith.constant 0.000000e+00 : f32
    %31 = vector.shape_cast %30 : vector<32x1xi1> to vector<32x1xi1>
    %32 = vector.broadcast %31 : vector<32x1xi1> to vector<32x16xi1>
    %33 = vector.broadcast %cst_22 : f32 to vector<32x16xf32>
    %34 = arith.select %32, %17, %33 : vector<32x16xi1>, vector<32x16xf32>
    %cst_23 = arith.constant dense<0xFF800000> : vector<16xf32>
    %35 = vector.multi_reduction <maximumf>, %34, %cst_23 [0] : vector<32x16xf32> to vector<16xf32>
    %36 = vector.shape_cast %35 : vector<16xf32> to vector<1x16xf32>
    %37 = vector.extract_strided_slice %2 {offsets = [0, 2], sizes = [32, 1], strides = [1, 1]} : vector<32x4xf32> to vector<32x1xf32>
    %cst_24 = arith.constant 0.000000e+00 : f32
    %38 = vector.broadcast %cst_24 : f32 to vector<32x1xf32>
    %39 = arith.cmpf ogt, %37, %38 : vector<32x1xf32>
    %cst_25 = arith.constant 0.000000e+00 : f32
    %40 = vector.shape_cast %39 : vector<32x1xi1> to vector<32x1xi1>
    %41 = vector.broadcast %40 : vector<32x1xi1> to vector<32x16xi1>
    %42 = vector.broadcast %cst_25 : f32 to vector<32x16xf32>
    %43 = arith.select %41, %17, %42 : vector<32x16xi1>, vector<32x16xf32>
    %cst_26 = arith.constant dense<0xFF800000> : vector<16xf32>
    %44 = vector.multi_reduction <maximumf>, %43, %cst_26 [0] : vector<32x16xf32> to vector<16xf32>
    %45 = vector.shape_cast %44 : vector<16xf32> to vector<1x16xf32>
    %46 = vector.extract_strided_slice %2 {offsets = [0, 3], sizes = [32, 1], strides = [1, 1]} : vector<32x4xf32> to vector<32x1xf32>
    %cst_27 = arith.constant 0.000000e+00 : f32
    %47 = vector.broadcast %cst_27 : f32 to vector<32x1xf32>
    %48 = arith.cmpf ogt, %46, %47 : vector<32x1xf32>
    %cst_28 = arith.constant 0.000000e+00 : f32
    %49 = vector.shape_cast %48 : vector<32x1xi1> to vector<32x1xi1>
    %50 = vector.broadcast %49 : vector<32x1xi1> to vector<32x16xi1>
    %51 = vector.broadcast %cst_28 : f32 to vector<32x16xf32>
    %52 = arith.select %50, %17, %51 : vector<32x16xi1>, vector<32x16xf32>
    %cst_29 = arith.constant dense<0xFF800000> : vector<16xf32>
    %53 = vector.multi_reduction <maximumf>, %52, %cst_29 [0] : vector<32x16xf32> to vector<16xf32>
    %54 = vector.shape_cast %53 : vector<16xf32> to vector<1x16xf32>
    %55 = tpu.concatenate %27, %36, %45, %54 in 0 : vector<1x16xf32>, vector<1x16xf32>, vector<1x16xf32>, vector<1x16xf32> -> vector<4x16xf32>
    %56 = arith.truncf %55 : vector<4x16xf32> to vector<4x16xbf16>
    %cst_30 = arith.constant dense<0.000000e+00> : vector<4x32xf32>
    %57 = tpu.matmul %56, %10, %cst_30 {dimension_numbers = #tpu.dot_dimension_numbers<[1], [0], [0], [1], [0, 0, 1, 1], [], []>} : vector<4x16xbf16>, vector<16x32xbf16>, vector<4x32xf32> -> vector<4x32xf32>
    %58 = arith.addf %4, %57 : vector<4x32xf32>
    %c0_31 = arith.constant 0 : index
    %c0_32 = arith.constant 0 : index
    %c0_33 = arith.constant 0 : index
    %59 = vector.load %arg7[%c0_31, %c0_32, %c0_33] : memref<1x16x16xbf16, #tpu.memory_space<vmem>>, vector<1x16x16xbf16>
    %60 = vector.shape_cast %59 : vector<1x16x16xbf16> to vector<16x16xbf16>
    %c0_34 = arith.constant 0 : index
    %c0_35 = arith.constant 0 : index
    %c0_36 = arith.constant 0 : index
    %61 = vector.load %arg8[%c0_34, %c0_35, %c0_36] : memref<1x1x16xf32, #tpu.memory_space<vmem>>, vector<1x1x16xf32>
    %62 = vector.shape_cast %61 : vector<1x1x16xf32> to vector<1x16xf32>
    %c0_37 = arith.constant 0 : index
    %c0_38 = arith.constant 0 : index
    %c0_39 = arith.constant 0 : index
    %63 = vector.load %arg9[%c0_37, %c0_38, %c0_39] : memref<1x16x32xbf16, #tpu.memory_space<vmem>>, vector<1x16x32xbf16>
    %64 = vector.shape_cast %63 : vector<1x16x32xbf16> to vector<16x32xbf16>
    %cst_40 = arith.constant dense<0.000000e+00> : vector<32x16xf32>
    %65 = tpu.matmul %18, %60, %cst_40 {dimension_numbers = #tpu.dot_dimension_numbers<[1], [0], [0], [1], [0, 0, 1, 1], [], []>} : vector<32x16xbf16>, vector<16x16xbf16>, vector<32x16xf32> -> vector<32x16xf32>
    %66 = arith.truncf %65 : vector<32x16xf32> to vector<32x16xbf16>
    %cst_41 = arith.constant dense<0.000000e+00> : vector<32x16xf32>
    %67 = tpu.matmul %1, %66, %cst_41 {dimension_numbers = #tpu.dot_dimension_numbers<[1], [0], [0], [1], [0, 0, 1, 1], [], []>} : vector<32x32xbf16>, vector<32x16xbf16>, vector<32x16xf32> -> vector<32x16xf32>
    %68 = vector.broadcast %62 : vector<1x16xf32> to vector<32x16xf32>
    %69 = arith.addf %67, %68 : vector<32x16xf32>
    %cst_42 = arith.constant 0.000000e+00 : f32
    %70 = vector.broadcast %cst_42 : f32 to vector<32x16xf32>
    %71 = arith.maximumf %69, %70 : vector<32x16xf32>
    %72 = vector.extract_strided_slice %2 {offsets = [0, 0], sizes = [32, 1], strides = [1, 1]} : vector<32x4xf32> to vector<32x1xf32>
    %cst_43 = arith.constant 0.000000e+00 : f32
    %73 = vector.broadcast %cst_43 : f32 to vector<32x1xf32>
    %74 = arith.cmpf ogt, %72, %73 : vector<32x1xf32>
    %cst_44 = arith.constant 0.000000e+00 : f32
    %75 = vector.shape_cast %74 : vector<32x1xi1> to vector<32x1xi1>
    %76 = vector.broadcast %75 : vector<32x1xi1> to vector<32x16xi1>
    %77 = vector.broadcast %cst_44 : f32 to vector<32x16xf32>
    %78 = arith.select %76, %71, %77 : vector<32x16xi1>, vector<32x16xf32>
    %cst_45 = arith.constant dense<0xFF800000> : vector<16xf32>
    %79 = vector.multi_reduction <maximumf>, %78, %cst_45 [0] : vector<32x16xf32> to vector<16xf32>
    %80 = vector.shape_cast %79 : vector<16xf32> to vector<1x16xf32>
    %81 = vector.extract_strided_slice %2 {offsets = [0, 1], sizes = [32, 1], strides = [1, 1]} : vector<32x4xf32> to vector<32x1xf32>
    %cst_46 = arith.constant 0.000000e+00 : f32
    %82 = vector.broadcast %cst_46 : f32 to vector<32x1xf32>
    %83 = arith.cmpf ogt, %81, %82 : vector<32x1xf32>
    %cst_47 = arith.constant 0.000000e+00 : f32
    %84 = vector.shape_cast %83 : vector<32x1xi1> to vector<32x1xi1>
    %85 = vector.broadcast %84 : vector<32x1xi1> to vector<32x16xi1>
    %86 = vector.broadcast %cst_47 : f32 to vector<32x16xf32>
    %87 = arith.select %85, %71, %86 : vector<32x16xi1>, vector<32x16xf32>
    %cst_48 = arith.constant dense<0xFF800000> : vector<16xf32>
    %88 = vector.multi_reduction <maximumf>, %87, %cst_48 [0] : vector<32x16xf32> to vector<16xf32>
    %89 = vector.shape_cast %88 : vector<16xf32> to vector<1x16xf32>
    %90 = vector.extract_strided_slice %2 {offsets = [0, 2], sizes = [32, 1], strides = [1, 1]} : vector<32x4xf32> to vector<32x1xf32>
    %cst_49 = arith.constant 0.000000e+00 : f32
    %91 = vector.broadcast %cst_49 : f32 to vector<32x1xf32>
    %92 = arith.cmpf ogt, %90, %91 : vector<32x1xf32>
    %cst_50 = arith.constant 0.000000e+00 : f32
    %93 = vector.shape_cast %92 : vector<32x1xi1> to vector<32x1xi1>
    %94 = vector.broadcast %93 : vector<32x1xi1> to vector<32x16xi1>
    %95 = vector.broadcast %cst_50 : f32 to vector<32x16xf32>
    %96 = arith.select %94, %71, %95 : vector<32x16xi1>, vector<32x16xf32>
    %cst_51 = arith.constant dense<0xFF800000> : vector<16xf32>
    %97 = vector.multi_reduction <maximumf>, %96, %cst_51 [0] : vector<32x16xf32> to vector<16xf32>
    %98 = vector.shape_cast %97 : vector<16xf32> to vector<1x16xf32>
    %99 = vector.extract_strided_slice %2 {offsets = [0, 3], sizes = [32, 1], strides = [1, 1]} : vector<32x4xf32> to vector<32x1xf32>
    %cst_52 = arith.constant 0.000000e+00 : f32
    %100 = vector.broadcast %cst_52 : f32 to vector<32x1xf32>
    %101 = arith.cmpf ogt, %99, %100 : vector<32x1xf32>
    %cst_53 = arith.constant 0.000000e+00 : f32
    %102 = vector.shape_cast %101 : vector<32x1xi1> to vector<32x1xi1>
    %103 = vector.broadcast %102 : vector<32x1xi1> to vector<32x16xi1>
    %104 = vector.broadcast %cst_53 : f32 to vector<32x16xf32>
    %105 = arith.select %103, %71, %104 : vector<32x16xi1>, vector<32x16xf32>
    %cst_54 = arith.constant dense<0xFF800000> : vector<16xf32>
    %106 = vector.multi_reduction <maximumf>, %105, %cst_54 [0] : vector<32x16xf32> to vector<16xf32>
    %107 = vector.shape_cast %106 : vector<16xf32> to vector<1x16xf32>
    %108 = tpu.concatenate %80, %89, %98, %107 in 0 : vector<1x16xf32>, vector<1x16xf32>, vector<1x16xf32>, vector<1x16xf32> -> vector<4x16xf32>
    %109 = arith.truncf %108 : vector<4x16xf32> to vector<4x16xbf16>
    %cst_55 = arith.constant dense<0.000000e+00> : vector<4x32xf32>
    %110 = tpu.matmul %109, %64, %cst_55 {dimension_numbers = #tpu.dot_dimension_numbers<[1], [0], [0], [1], [0, 0, 1, 1], [], []>} : vector<4x16xbf16>, vector<16x32xbf16>, vector<4x32xf32> -> vector<4x32xf32>
    %111 = arith.addf %58, %110 : vector<4x32xf32>
    %c0_56 = arith.constant 0 : index
    %c0_57 = arith.constant 0 : index
    %c0_58 = arith.constant 0 : index
    %112 = vector.load %arg10[%c0_56, %c0_57, %c0_58] : memref<1x4x32xf32, #tpu.memory_space<vmem>>, vector<1x4x32xf32>
    %113 = vector.shape_cast %112 : vector<1x4x32xf32> to vector<4x32xf32>
    %114 = vector.shape_cast %111 : vector<4x32xf32> to vector<1x4x32xf32>
    tpu.vector_store %arg10[%c0_56, %c0_57, %c0_58], %114 {strides = array<i32>} : memref<1x4x32xf32, #tpu.memory_space<vmem>>, vector<1x4x32xf32>,
    return
  }
  func.func @transform_0(%arg0: i32) -> (i32, i32, i32) {
    %c0_i32 = arith.constant 0 : i32
    %c0_i32_0 = arith.constant 0 : i32
    %c0_i32_1 = arith.constant 0 : i32
    return %arg0, %c0_i32, %c0_i32_0 : i32, i32, i32
  }
  func.func @transform_1(%arg0: i32) -> (i32, i32) {
    %c0_i32 = arith.constant 0 : i32
    %c0_i32_0 = arith.constant 0 : i32
    %c0_i32_1 = arith.constant 0 : i32
    return %c0_i32, %c0_i32_0 : i32, i32
  }
  func.func @transform_2(%arg0: i32) -> (i32, i32) {
    %c0_i32 = arith.constant 0 : i32
    %c0_i32_0 = arith.constant 0 : i32
    %c0_i32_1 = arith.constant 0 : i32
    return %c0_i32, %c0_i32_0 : i32, i32
  }
  func.func @transform_3(%arg0: i32) -> (i32, i32, i32) {
    %c0_i32 = arith.constant 0 : i32
    %c0_i32_0 = arith.constant 0 : i32
    %c0_i32_1 = arith.constant 0 : i32
    return %arg0, %c0_i32, %c0_i32_0 : i32, i32, i32
  }
  func.func @transform_4(%arg0: i32) -> (i32, i32, i32) {
    %c0_i32 = arith.constant 0 : i32
    %c0_i32_0 = arith.constant 0 : i32
    %c0_i32_1 = arith.constant 0 : i32
    return %arg0, %c0_i32, %c0_i32_0 : i32, i32, i32
  }
  func.func @transform_5(%arg0: i32) -> (i32, i32, i32) {
    %c0_i32 = arith.constant 0 : i32
    %c0_i32_0 = arith.constant 0 : i32
    %c0_i32_1 = arith.constant 0 : i32
    return %arg0, %c0_i32, %c0_i32_0 : i32, i32, i32
  }
  func.func @transform_6(%arg0: i32) -> (i32, i32, i32) {
    %c0_i32 = arith.constant 0 : i32
    %c0_i32_0 = arith.constant 0 : i32
    %c0_i32_1 = arith.constant 0 : i32
    return %arg0, %c0_i32, %c0_i32_0 : i32, i32, i32
  }
  func.func @transform_7(%arg0: i32) -> (i32, i32, i32) {
    %c0_i32 = arith.constant 0 : i32
    %c0_i32_0 = arith.constant 0 : i32
    %c0_i32_1 = arith.constant 0 : i32
    return %arg0, %c0_i32, %c0_i32_0 : i32, i32, i32
  }
  func.func @transform_8(%arg0: i32) -> (i32, i32, i32) {
    %c0_i32 = arith.constant 0 : i32
    %c0_i32_0 = arith.constant 0 : i32
    %c0_i32_1 = arith.constant 0 : i32
    return %arg0, %c0_i32, %c0_i32_0 : i32, i32, i32
  }
  func.func @transform_9(%arg0: i32) -> (i32, i32, i32) {
    %c0_i32 = arith.constant 0 : i32
    %c0_i32_0 = arith.constant 0 : i32
    %c0_i32_1 = arith.constant 0 : i32
    return %arg0, %c0_i32, %c0_i32_0 : i32, i32, i32
  }
}

module attributes {stable_mosaic.version = 11 : i64} {
  func.func @_head_kernel(%arg0: memref<2x4x32xf32, #tpu.memory_space<vmem>>, %arg1: memref<1x32xf32, #tpu.memory_space<vmem>>, %arg2: memref<1x32xf32, #tpu.memory_space<vmem>>, %arg3: memref<1x32xf32, #tpu.memory_space<vmem>>, %arg4: memref<4x16xbf16, #tpu.memory_space<vmem>>, %arg5: memref<16x16xbf16, #tpu.memory_space<vmem>>, %arg6: memref<1x16xf32, #tpu.memory_space<vmem>>, %arg7: memref<1x16xf32, #tpu.memory_space<vmem>>, %arg8: memref<1x16xf32, #tpu.memory_space<vmem>>, %arg9: memref<32x128xbf16, #tpu.memory_space<vmem>>, %arg10: memref<16x128xbf16, #tpu.memory_space<vmem>>, %arg11: memref<1x128xf32, #tpu.memory_space<vmem>>, %arg12: memref<1x128xf32, #tpu.memory_space<vmem>>, %arg13: memref<1x128xf32, #tpu.memory_space<vmem>>, %arg14: memref<4x128xf32, #tpu.memory_space<vmem>>) attributes {dimension_semantics = [], scalar_prefetch = 0 : i64, scratch_operands = 0 : i64, tpu.core_type = #tpu.core_type<tc>} {
    %c0 = arith.constant 0 : index
    %c0_0 = arith.constant 0 : index
    %c0_1 = arith.constant 0 : index
    %0 = vector.load %arg0[%c0, %c0_0, %c0_1] : memref<2x4x32xf32, #tpu.memory_space<vmem>>, vector<2x4x32xf32>
    %cst = arith.constant dense<0.000000e+00> : vector<4x32xf32>
    %1 = vector.multi_reduction <add>, %0, %cst [0] : vector<2x4x32xf32> to vector<4x32xf32>
    %c0_2 = arith.constant 0 : index
    %c0_3 = arith.constant 0 : index
    %2 = vector.load %arg1[%c0_2, %c0_3] : memref<1x32xf32, #tpu.memory_space<vmem>>, vector<1x32xf32>
    %3 = vector.broadcast %2 : vector<1x32xf32> to vector<4x32xf32>
    %4 = arith.addf %1, %3 : vector<4x32xf32>
    %c0_4 = arith.constant 0 : index
    %c0_5 = arith.constant 0 : index
    %5 = vector.load %arg2[%c0_4, %c0_5] : memref<1x32xf32, #tpu.memory_space<vmem>>, vector<1x32xf32>
    %c0_6 = arith.constant 0 : index
    %c0_7 = arith.constant 0 : index
    %6 = vector.load %arg3[%c0_6, %c0_7] : memref<1x32xf32, #tpu.memory_space<vmem>>, vector<1x32xf32>
    %cst_8 = arith.constant dense<0.000000e+00> : vector<4xf32>
    %7 = vector.multi_reduction <add>, %4, %cst_8 [1] : vector<4x32xf32> to vector<4xf32>
    %8 = vector.shape_cast %7 : vector<4xf32> to vector<4x1xf32>
    %cst_9 = arith.constant 3.200000e+01 : f32
    %9 = vector.broadcast %cst_9 : f32 to vector<4x1xf32>
    %10 = arith.divf %8, %9 : vector<4x1xf32>
    %11 = vector.broadcast %10 : vector<4x1xf32> to vector<4x32xf32>
    %12 = arith.subf %4, %11 : vector<4x32xf32>
    %13 = arith.mulf %12, %12 : vector<4x32xf32>
    %cst_10 = arith.constant dense<0.000000e+00> : vector<4xf32>
    %14 = vector.multi_reduction <add>, %13, %cst_10 [1] : vector<4x32xf32> to vector<4xf32>
    %15 = vector.shape_cast %14 : vector<4xf32> to vector<4x1xf32>
    %cst_11 = arith.constant 3.200000e+01 : f32
    %16 = vector.broadcast %cst_11 : f32 to vector<4x1xf32>
    %17 = arith.divf %15, %16 : vector<4x1xf32>
    %18 = vector.broadcast %10 : vector<4x1xf32> to vector<4x32xf32>
    %19 = arith.subf %4, %18 : vector<4x32xf32>
    %cst_12 = arith.constant 9.99999974E-6 : f32
    %20 = vector.broadcast %cst_12 : f32 to vector<4x1xf32>
    %21 = arith.addf %17, %20 : vector<4x1xf32>
    %22 = math.rsqrt %21 : vector<4x1xf32>
    %23 = vector.broadcast %22 : vector<4x1xf32> to vector<4x32xf32>
    %24 = arith.mulf %19, %23 : vector<4x32xf32>
    %25 = vector.broadcast %5 : vector<1x32xf32> to vector<4x32xf32>
    %26 = arith.mulf %24, %25 : vector<4x32xf32>
    %27 = vector.broadcast %6 : vector<1x32xf32> to vector<4x32xf32>
    %28 = arith.addf %26, %27 : vector<4x32xf32>
    %cst_13 = arith.constant 0.000000e+00 : f32
    %29 = vector.broadcast %cst_13 : f32 to vector<4x32xf32>
    %30 = arith.maximumf %28, %29 : vector<4x32xf32>
    %c0_14 = arith.constant 0 : index
    %c0_15 = arith.constant 0 : index
    %31 = vector.load %arg4[%c0_14, %c0_15] : memref<4x16xbf16, #tpu.memory_space<vmem>>, vector<4x16xbf16>
    %c0_16 = arith.constant 0 : index
    %c0_17 = arith.constant 0 : index
    %32 = vector.load %arg5[%c0_16, %c0_17] : memref<16x16xbf16, #tpu.memory_space<vmem>>, vector<16x16xbf16>
    %cst_18 = arith.constant dense<0.000000e+00> : vector<4x16xf32>
    %33 = tpu.matmul %31, %32, %cst_18 {dimension_numbers = #tpu.dot_dimension_numbers<[1], [0], [0], [1], [0, 0, 1, 1], [], []>} : vector<4x16xbf16>, vector<16x16xbf16>, vector<4x16xf32> -> vector<4x16xf32>
    %c0_19 = arith.constant 0 : index
    %c0_20 = arith.constant 0 : index
    %34 = vector.load %arg6[%c0_19, %c0_20] : memref<1x16xf32, #tpu.memory_space<vmem>>, vector<1x16xf32>
    %35 = vector.broadcast %34 : vector<1x16xf32> to vector<4x16xf32>
    %36 = arith.addf %33, %35 : vector<4x16xf32>
    %c0_21 = arith.constant 0 : index
    %c0_22 = arith.constant 0 : index
    %37 = vector.load %arg7[%c0_21, %c0_22] : memref<1x16xf32, #tpu.memory_space<vmem>>, vector<1x16xf32>
    %c0_23 = arith.constant 0 : index
    %c0_24 = arith.constant 0 : index
    %38 = vector.load %arg8[%c0_23, %c0_24] : memref<1x16xf32, #tpu.memory_space<vmem>>, vector<1x16xf32>
    %cst_25 = arith.constant dense<0.000000e+00> : vector<4xf32>
    %39 = vector.multi_reduction <add>, %36, %cst_25 [1] : vector<4x16xf32> to vector<4xf32>
    %40 = vector.shape_cast %39 : vector<4xf32> to vector<4x1xf32>
    %cst_26 = arith.constant 1.600000e+01 : f32
    %41 = vector.broadcast %cst_26 : f32 to vector<4x1xf32>
    %42 = arith.divf %40, %41 : vector<4x1xf32>
    %43 = vector.broadcast %42 : vector<4x1xf32> to vector<4x16xf32>
    %44 = arith.subf %36, %43 : vector<4x16xf32>
    %45 = arith.mulf %44, %44 : vector<4x16xf32>
    %cst_27 = arith.constant dense<0.000000e+00> : vector<4xf32>
    %46 = vector.multi_reduction <add>, %45, %cst_27 [1] : vector<4x16xf32> to vector<4xf32>
    %47 = vector.shape_cast %46 : vector<4xf32> to vector<4x1xf32>
    %cst_28 = arith.constant 1.600000e+01 : f32
    %48 = vector.broadcast %cst_28 : f32 to vector<4x1xf32>
    %49 = arith.divf %47, %48 : vector<4x1xf32>
    %50 = vector.broadcast %42 : vector<4x1xf32> to vector<4x16xf32>
    %51 = arith.subf %36, %50 : vector<4x16xf32>
    %cst_29 = arith.constant 9.99999974E-6 : f32
    %52 = vector.broadcast %cst_29 : f32 to vector<4x1xf32>
    %53 = arith.addf %49, %52 : vector<4x1xf32>
    %54 = math.rsqrt %53 : vector<4x1xf32>
    %55 = vector.broadcast %54 : vector<4x1xf32> to vector<4x16xf32>
    %56 = arith.mulf %51, %55 : vector<4x16xf32>
    %57 = vector.broadcast %37 : vector<1x16xf32> to vector<4x16xf32>
    %58 = arith.mulf %56, %57 : vector<4x16xf32>
    %59 = vector.broadcast %38 : vector<1x16xf32> to vector<4x16xf32>
    %60 = arith.addf %58, %59 : vector<4x16xf32>
    %cst_30 = arith.constant 0.000000e+00 : f32
    %61 = vector.broadcast %cst_30 : f32 to vector<4x16xf32>
    %62 = arith.maximumf %60, %61 : vector<4x16xf32>
    %63 = arith.truncf %30 : vector<4x32xf32> to vector<4x32xbf16>
    %c0_31 = arith.constant 0 : index
    %c0_32 = arith.constant 0 : index
    %64 = vector.load %arg9[%c0_31, %c0_32] : memref<32x128xbf16, #tpu.memory_space<vmem>>, vector<32x128xbf16>
    %cst_33 = arith.constant dense<0.000000e+00> : vector<4x128xf32>
    %65 = tpu.matmul %63, %64, %cst_33 {dimension_numbers = #tpu.dot_dimension_numbers<[1], [0], [0], [1], [0, 0, 1, 1], [], []>} : vector<4x32xbf16>, vector<32x128xbf16>, vector<4x128xf32> -> vector<4x128xf32>
    %66 = arith.truncf %62 : vector<4x16xf32> to vector<4x16xbf16>
    %c0_34 = arith.constant 0 : index
    %c0_35 = arith.constant 0 : index
    %67 = vector.load %arg10[%c0_34, %c0_35] : memref<16x128xbf16, #tpu.memory_space<vmem>>, vector<16x128xbf16>
    %cst_36 = arith.constant dense<0.000000e+00> : vector<4x128xf32>
    %68 = tpu.matmul %66, %67, %cst_36 {dimension_numbers = #tpu.dot_dimension_numbers<[1], [0], [0], [1], [0, 0, 1, 1], [], []>} : vector<4x16xbf16>, vector<16x128xbf16>, vector<4x128xf32> -> vector<4x128xf32>
    %69 = arith.addf %65, %68 : vector<4x128xf32>
    %c0_37 = arith.constant 0 : index
    %c0_38 = arith.constant 0 : index
    %70 = vector.load %arg11[%c0_37, %c0_38] : memref<1x128xf32, #tpu.memory_space<vmem>>, vector<1x128xf32>
    %71 = vector.broadcast %70 : vector<1x128xf32> to vector<4x128xf32>
    %72 = arith.addf %69, %71 : vector<4x128xf32>
    %73 = tpu.iota {dimensions = array<i32: 1>} : vector<1x128xi32>
    %c4_i32 = arith.constant 4 : i32
    %74 = vector.broadcast %c4_i32 : i32 to vector<1x128xi32>
    %75 = arith.cmpi slt, %73, %74 : vector<1x128xi32>
    %76 = arith.extui %75 : vector<1x128xi1> to vector<1x128xi32>
    %77 = arith.sitofp %76 : vector<1x128xi32> to vector<1x128xf32>
    %cst_39 = arith.constant dense<0.000000e+00> : vector<4xf32>
    %78 = vector.multi_reduction <add>, %72, %cst_39 [1] : vector<4x128xf32> to vector<4xf32>
    %79 = vector.shape_cast %78 : vector<4xf32> to vector<4x1xf32>
    %cst_40 = arith.constant 4.000000e+00 : f32
    %80 = vector.broadcast %cst_40 : f32 to vector<4x1xf32>
    %81 = arith.divf %79, %80 : vector<4x1xf32>
    %82 = vector.broadcast %81 : vector<4x1xf32> to vector<4x128xf32>
    %83 = arith.subf %72, %82 : vector<4x128xf32>
    %84 = vector.broadcast %77 : vector<1x128xf32> to vector<4x128xf32>
    %85 = arith.mulf %83, %84 : vector<4x128xf32>
    %86 = arith.mulf %85, %85 : vector<4x128xf32>
    %cst_41 = arith.constant dense<0.000000e+00> : vector<4xf32>
    %87 = vector.multi_reduction <add>, %86, %cst_41 [1] : vector<4x128xf32> to vector<4xf32>
    %88 = vector.shape_cast %87 : vector<4xf32> to vector<4x1xf32>
    %cst_42 = arith.constant 4.000000e+00 : f32
    %89 = vector.broadcast %cst_42 : f32 to vector<4x1xf32>
    %90 = arith.divf %88, %89 : vector<4x1xf32>
    %91 = vector.broadcast %81 : vector<4x1xf32> to vector<4x128xf32>
    %92 = arith.subf %72, %91 : vector<4x128xf32>
    %cst_43 = arith.constant 9.99999974E-6 : f32
    %93 = vector.broadcast %cst_43 : f32 to vector<4x1xf32>
    %94 = arith.addf %90, %93 : vector<4x1xf32>
    %95 = math.rsqrt %94 : vector<4x1xf32>
    %96 = vector.broadcast %95 : vector<4x1xf32> to vector<4x128xf32>
    %97 = arith.mulf %92, %96 : vector<4x128xf32>
    %c0_44 = arith.constant 0 : index
    %c0_45 = arith.constant 0 : index
    %98 = vector.load %arg12[%c0_44, %c0_45] : memref<1x128xf32, #tpu.memory_space<vmem>>, vector<1x128xf32>
    %99 = vector.broadcast %98 : vector<1x128xf32> to vector<4x128xf32>
    %100 = arith.mulf %97, %99 : vector<4x128xf32>
    %c0_46 = arith.constant 0 : index
    %c0_47 = arith.constant 0 : index
    %101 = vector.load %arg13[%c0_46, %c0_47] : memref<1x128xf32, #tpu.memory_space<vmem>>, vector<1x128xf32>
    %102 = vector.broadcast %101 : vector<1x128xf32> to vector<4x128xf32>
    %103 = arith.addf %100, %102 : vector<4x128xf32>
    %c0_48 = arith.constant 0 : index
    %c0_49 = arith.constant 0 : index
    %104 = vector.load %arg14[%c0_48, %c0_49] : memref<4x128xf32, #tpu.memory_space<vmem>>, vector<4x128xf32>
    tpu.vector_store %arg14[%c0_48, %c0_49], %103 {strides = array<i32>} : memref<4x128xf32, #tpu.memory_space<vmem>>, vector<4x128xf32>,
    return
  }
}

</mosaic_0001>

<bundles_post_ra>
// kernel: multigcn_forward.3
= control target key start
LH: loop header
LB: loop body
LE: loop exit
PB: predicated region body
PF: predicated region fallthrough
CT: control target
= control target key end

     0   :  { %v438_v1 = vmov 0.0   ;;  %vm439_vm0 = vmmov 0   ;;  %vm110_vm1 = vcmask 130048   ;;  %vm51_vm2 = vcmask 257024   ;;  %s583_s0 = inlined_call_operand.vmem [shape: f32[2,4,32], index: 0, kind: input, shape index: {}]   ;;  %s584_s1 = inlined_call_operand.vmem [shape: f32[1,32], index: 1, kind: input, shape index: {}]   ;;  %s585_s2 = inlined_call_operand.vmem [shape: f32[1,32], index: 2, kind: input, shape index: {}]   ;;  %s586_s3 = inlined_call_operand.vmem [shape: f32[1,32], index: 3, kind: input, shape index: {}]   ;;  %s587_s4 = inlined_call_operand.vmem [shape: bf16[4,16], index: 4, kind: input, shape index: {}]   ;;  %s588_s5 = inlined_call_operand.vmem [shape: bf16[16,16], index: 5, kind: input, shape index: {}]   ;;  %s589_s6 = inlined_call_operand.vmem [shape: f32[1,16], index: 6, kind: input, shape index: {}]   ;;  %s590_s7 = inlined_call_operand.vmem [shape: f32[1,16], index: 7, kind: input, shape index: {}]   ;;  %s591_s8 = inlined_call_operand.vmem [shape: f32[1,16], index: 8, kind: input, shape index: {}]   ;;  %s592_s9 = inlined_call_operand.vmem [shape: bf16[32,128], index: 9, kind: input, shape index: {}]   ;;  %s593_s10 = inlined_call_operand.vmem [shape: bf16[16,128], index: 10, kind: input, shape index: {}]   ;;  %s594_s11 = inlined_call_operand.vmem [shape: f32[1,128], index: 11, kind: input, shape index: {}]   ;;  %s595_s12 = inlined_call_operand.vmem [shape: f32[1,128], index: 12, kind: input, shape index: {}]   ;;  %s596_s13 = inlined_call_operand.vmem [shape: f32[1,128], index: 13, kind: input, shape index: {}]   ;;  %s597_s14 = inlined_call_operand.hbm [shape: f32[4,128], index: 14, kind: output, shape index: {}]  }
   0x1   :  { %v406_v0 = vld [vmem:[%s588_s5] sm:$0xff]   ;;  %383 = vmatprep.subr.bf16.mxu0 %v438_v1  ;;  %389 = vmatprep.subr.bf16.mxu1 %v438_v1 }
   0x2   :  { %v94_v2 = vld [vmem:[%s587_s4] sm:$0x3]  ;;  %384 = vmatpush3.bf16.msra.mxu0 %v406_v0  ;;  %385 = vmatprep.mubr.msk.bf16.mxu0 %vm439_vm0, %v438_v1  ;;  %v50_v4 = vld [vmem:[%s583_s0 + $0x4] sm:$0xf] }
   0x3   :  { %v49_v3 = vld [vmem:[%s583_s0] sm:$0xf]  ;;  %v53_v7 = vsel %vm51_vm2, %v50_v4, 0.0  ;;  %395 = vmatprep.subr.bf16.mxu0 %v438_v1  ;;  %391 = vmatprep.mubr.msk.bf16.mxu1 %vm439_vm0, %v438_v1 }
   0x4   :  { %v359_v5 = vld [vmem:[%s584_s1] ss:$0 sm:$0xff]  ;;  %v52_v6 = vsel %vm51_vm2, %v49_v3, 0.0 }
   0x5   :  { %v54_v8 = vadd.f32 %v53_v7, %v52_v6  ;;  %386 = vmatmul.mubr.msk.bf16.vlgmr.msra.gmra.mxu0 %vm110_vm1, %v94_v2 }
   0x6   :  { %19 = vsyncpa [#allocation3], 0  ;;  %399 = vmatprep.mubr.msk.bf16.mxu0 %vm439_vm0, %v438_v1  ;;  %v407_v16 = vld [vmem:[%s592_s9 + $0x8] sm:$0xff]   ;;  %v362_v17 = vld [vmem:[%s589_s6] ss:$0 sm:$0xff]  ;;  %vm156_vm3 = vcmask 125952   ;;  %v307_v2 = vlaneseq }
   0x7   :  { %v62_v9 = vadd.f32 %v359_v5, %v54_v8  ;;  %396 = vmatpush3.bf16.msra.mxu0 %v407_v16  ;;  %v408_v24 = vld [vmem:[%s592_s9] sm:$0xff]   ;;  %vm255_vm4 = vcmask 261120   ;;  %vm312_vm5 = vcmask 1043456   ;;  %s440_s17 = smov [#allocation2]  }
   0x8   :  { %397 = vmatprep.subr.bf16.mxu0 %v438_v1  ;;  %v360_v29 = vld [vmem:[%s585_s2] ss:$0 sm:$0xff]  ;;  %v308_v3 = vand.u32 127, %v307_v2  ;;  %s351_s18 = sshll.u32 %s440_s17, 4  ;;  %s352_s18 = int_to_ptr.vmem [resolvable:$true] %s351_s18 }
   0x9   :  { %v65_v10 = vsel %vm51_vm2, %v62_v9, 0.0  ;;  %v361_v31 = vld [vmem:[%s586_s3] ss:$0 sm:$0xff]  ;;  %s416_s19 = scalar_lea.vmem %s352_s18, 64  ;;  %p421_p1 = scmp.lt.s32.totalorder %s352_s18, %s352_s18 }
   0xa   :  { %66 = vadd.xlane.f32.xlu0 %v65_v10  ;;  %v409_v41 = vld [vmem:[%s593_s10] sm:$0xff]   ;;  %vm309_vm6 = vcmp.lt.s32.totalorder %v308_v3, 4  ;;  %p417_p0 = scmp.ne.s32.totalorder %s352_s18, %s416_s19  ;;  %p422_p2 = scmp.lt.s32.totalorder %s416_s19, %s416_s19 }
   0xb   :  { %398 = vmatpush3.bf16.msra.mxu0 %v408_v24  ;;  %390 = vmatpush3.bf16.msra.mxu1 %v409_v41  ;;  %v365_v46 = vld [vmem:[%s590_s7] ss:$0 sm:$0xff]  ;;  %v373_v6 = vsel %vm309_vm6, 1.0, %v438_v1 }
   0xc   :  { %v366_v48 = vld [vmem:[%s591_s8] ss:$0 sm:$0xff]  ;;  %p423_p3 = por %p422_p2, %p421_p1 }
   0xd   :  { %v372_v58 = vld [vmem:[%s594_s11] ss:$0 sm:$0xff] }
   0xe   :  { %p424_p4 = pnand %p423_p3, %p417_p0 }
  0x93   :  { %v67_v11 = vpop.xlane.xlu0 %66 }
  0x94   :  { %v69_v12 = vmul.f32 0.03125, %v67_v11 }
  0x96   :  { %v70_v13 = vsub.f32 %v62_v9, %v69_v12 }
  0x98   :  { %v71_v14 = vmul.f32 %v70_v13, %v70_v13 }
  0x9a   :  { %v72_v15 = vsel %vm51_vm2, %v71_v14, 0.0 }
  0x9b   :  { %73 = vadd.xlane.f32.xlu1 %v72_v15  ;;  %v374_v15 = vld [vmem:[%s595_s12] ss:$0 sm:$0xff] }
  0xc5   :  { %v148_v18 = vpop.f32.mrf.mxu0 }
  0xc6   :  { %v149_v19 = vadd.f32 %v362_v17, %v148_v18  ;;  %v375_v17 = vld [vmem:[%s596_s13] ss:$0 sm:$0xff] }
  0xc7   :  { %v387_v20 = vpop.f32.mrf.mxu0 }
  0xc8   :  { %v157_v21 = vsel %vm156_vm3, %v149_v19, 0.0 }
  0xc9   :  { %v151_v22 = vpop.f32.mrf.mxu0  ;;  %158 = vadd.xlane.f32.xlu0 %v157_v21 }
  0xcb   :  { %v388_v23 = vpop.f32.mrf.mxu0 }
 0x124   :  { %v74_v25 = vpop.xlane.xlu1 %73 }
 0x125   :  { %v75_v26 = vmul.f32 0.03125, %v74_v25 }
 0x127   :  { %v76_v27 = vadd.f32 1e-05, %v75_v26 }
 0x129   :  { %410 = vrsqrt.f32 %v76_v27 }
 0x136   :  { %v411_v28 = vpop.eup %410 }
 0x137   :  { %v78_v30 = vmul.f32 %v411_v28, %v70_v13 }
 0x139   :  { %v85_v32 = vmul.f32 %v360_v29, %v78_v30 }
 0x13b   :  { %v92_v33 = vadd.f32 %v361_v31, %v85_v32 }
 0x13d   :  { %v93_v34 = vmax.f32 %v92_v33, 0.0 }
 0x13f   :  { %v186_v35 = vpack.c.bf16 %v93_v34, %v93_v34 }
 0x141   :  { %400 = vmatmul.mubr.msk.bf16.vlgmr.msra.gmra.mxu0 %vm255_vm4, %v186_v35 }
 0x152   :  { %v159_v36 = vpop.xlane.xlu0 %158 }
 0x153   :  { %v161_v37 = vmul.f32 0.0625, %v159_v36 }
 0x155   :  { %v162_v38 = vsub.f32 %v149_v19, %v161_v37 }
 0x157   :  { %v163_v39 = vmul.f32 %v162_v38, %v162_v38 }
 0x159   :  { %v164_v40 = vsel %vm156_vm3, %v163_v39, 0.0 }
 0x15a   :  { %165 = vadd.xlane.f32.xlu1 %v164_v40 }
 0x1e3   :  { %v166_v42 = vpop.xlane.xlu1 %165 }
 0x1e4   :  { %v167_v43 = vmul.f32 0.0625, %v166_v42 }
 0x1e6   :  { %v168_v44 = vadd.f32 1e-05, %v167_v43 }
 0x1e8   :  { %412 = vrsqrt.f32 %v168_v44 }
 0x1f5   :  { %v413_v45 = vpop.eup %412 }
 0x1f6   :  { %v170_v47 = vmul.f32 %v413_v45, %v162_v38 }
 0x1f8   :  { %v177_v49 = vmul.f32 %v365_v46, %v170_v47 }
 0x1fa   :  { %v184_v50 = vadd.f32 %v366_v48, %v177_v49 }
 0x1fc   :  { %v185_v51 = vmax.f32 %v184_v50, 0.0 }
 0x1fe   :  { %v191_v52 = vpack.c.bf16 %v185_v51, %v185_v51 }
 0x200   :  { %392 = vmatmul.mubr.msk.bf16.vlgmr.msra.gmra.mxu1 %vm110_vm1, %v191_v52 }
 0x201   :  { %v293_v53 = vpop.f32.mrf.mxu0 }
 0x203   :  { %v401_v54 = vpop.f32.mrf.mxu0 }
 0x205   :  { %v296_v55 = vpop.f32.mrf.mxu0 }
 0x207   :  { %v402_v56 = vpop.f32.mrf.mxu0 }
 0x2c0   :  { %v237_v57 = vpop.f32.mrf.mxu1 }
 0x2c1   :  { %v294_v59 = vadd.f32 %v293_v53, %v237_v57 }
 0x2c2   :  { %v393_v60 = vpop.f32.mrf.mxu1 }
 0x2c3   :  { %v306_v61 = vadd.f32 %v372_v58, %v294_v59 }
 0x2c4   :  { %v240_v62 = vpop.f32.mrf.mxu1 }
 0x2c5   :  { %v313_v63 = vsel %vm312_vm5, %v306_v61, 0.0 }
 0x2c6   :  { %314 = vadd.xlane.f32.xlu0 %v313_v63  ;;  %v394_v0 = vpop.f32.mrf.mxu1 }
 0x34f   :  { %v315_v4 = vpop.xlane.xlu0 %314 }
 0x350   :  { %v317_v5 = vmul.f32 0.25, %v315_v4 }
 0x352   :  { %v318_v7 = vsub.f32 %v306_v61, %v317_v5 }
 0x354   :  { %v319_v8 = vmul.f32 %v373_v6, %v318_v7 }
 0x356   :  { %v320_v9 = vmul.f32 %v319_v8, %v319_v8 }
 0x358   :  { %v321_v10 = vsel %vm312_vm5, %v320_v9, 0.0 }
 0x359   :  { %322 = vadd.xlane.f32.xlu1 %v321_v10 }
 0x3e2   :  { %v323_v11 = vpop.xlane.xlu1 %322 }
 0x3e3   :  { %v324_v12 = vmul.f32 0.25, %v323_v11 }
 0x3e5   :  { %v325_v13 = vadd.f32 1e-05, %v324_v12 }
 0x3e7   :  { %414 = vrsqrt.f32 %v325_v13 }
 0x3f4   :  { %v415_v14 = vpop.eup %414 }
 0x3f5   :  { %v327_v16 = vmul.f32 %v415_v14, %v318_v7 }
 0x3f7   :  { %v335_v1 = vmul.f32 %v374_v15, %v327_v16 }
 0x3f9   :  { %v343_v18 = vadd.f32 %v375_v17, %v335_v1 }
 0x3fb   :  { %344 = vst [vmem:[#allocation2] sm:$0xf] %v343_v18 }
 0x3fc   :  { %427 = shalt.err (!%p424_p4)
}
 0x3fd   :  { %354 = dma.vmem_to_hbm [thread:$0]  %s352_s18, 64, %s597_s14, [#allocation3]  }
 0x3fe   :  { %436 = dma.done.wait [#allocation3], 64  }
 0x3ff   :  { %437 = vsyncadd [#allocation3], 4294967232 }
 0x400   :  { %358 = vsyncpa [#allocation3], 1 }

// kernel: multigcn_forward.2
= control target key start
LH: loop header
LB: loop body
LE: loop exit
PB: predicated region body
PF: predicated region fallthrough
CT: control target
= control target key end

     0   :  { %s1361_s30 = smov 0   ;;  %s1615_s0 = inlined_call_operand.vmem [shape: bf16[2,32,32], index: 0, kind: input, shape index: {}]   ;;  %s1616_s1 = inlined_call_operand.vmem [shape: bf16[32,8], index: 1, kind: input, shape index: {}]   ;;  %s1617_s2 = inlined_call_operand.vmem [shape: f32[32,4], index: 2, kind: input, shape index: {}]   ;;  %s1618_s3 = inlined_call_operand.vmem [shape: bf16[2,8,16], index: 3, kind: input, shape index: {}]   ;;  %s1619_s4 = inlined_call_operand.vmem [shape: f32[2,1,16], index: 4, kind: input, shape index: {}]   ;;  %s1620_s5 = inlined_call_operand.vmem [shape: bf16[2,16,32], index: 5, kind: input, shape index: {}]   ;;  %s1621_s6 = inlined_call_operand.vmem [shape: bf16[2,16,16], index: 6, kind: input, shape index: {}]   ;;  %s1622_s7 = inlined_call_operand.vmem [shape: f32[2,1,16], index: 7, kind: input, shape index: {}]   ;;  %s1623_s8 = inlined_call_operand.vmem [shape: bf16[2,16,32], index: 8, kind: input, shape index: {}]   ;;  %s1624_s9 = inlined_call_operand.vmem [shape: f32[2,4,32], index: 9, kind: output, shape index: {}]  }
   0x1 LB: > { %s1169_s10 = sadd.s32 4294967295, %s1303_s30   ;;  %p1173_p0 = scmp.ge.s32.totalorder %s1303_s30, 1  ;;  %s1303_s30 = sphi %s1361_s30, %s19_s30  }
   0x2   : > { %p342_p1 = scmp.lt.s32.totalorder %s1303_s30, 3 }
   0x4   : > { %p343_p2 = pnand %p1173_p0, %p342_p1 }
   0x5   : > { %p402_p3 = scmp.lt.s32.totalorder (!%p343_p2), %s1169_s10, 1 }
   0x6   : > { %346 = sbr.rel (%p343_p2) target bundleno = 1074 (0x432), region = 56 }
   0xb   : > { %v1290_v0 = vld [vmem:[%s1616_s1] sm:$0xff]   ;;  %vm463_vm0 = vcmask 64512   ;;  %s1638_s10 = smov (!%p402_p3, %s1169_s10), 1  ;;  %vm470_vm1 = vcmask 1043456   ;;  %v1291_v3 = vld [vmem:[%s1616_s1 + $0x8] sm:$0xff]   ;;  %vm541_vm2 = vcmask 261120  }
   0xc   : > { %1229 = vmatprep.mubr.msk.bf16.mxu0 %vm463_vm0, %v1290_v0  ;;  %s1176_s13 = sshll.u32 %s1638_s10, 2  ;;  %s1205_s19 = sshll.u32 %s1638_s10, 4  ;;  %v443_v5 = vld [vmem:[%s1617_s2 + $0x10] sm:$0xff]  ;;  %v444_v6 = vld [vmem:[%s1617_s2 + $0x18] sm:$0xff]  ;;  %v1305_v7 = vmov 0   ;;  %v442_v8 = vld [vmem:[%s1617_s2 + $0x8] sm:$0xff] }
   0xd   : > { %s410_s16 = scalar_lea.vmem %s1618_s3, %s1176_s13  ;;  %s1387_s22 = scalar_lea.vmem %s1615_s0, %s1205_s19  ;;  %1283 = vset.pattern.permute.xlu1 %v1305_v7  ;;  %vm605_vm3 = vcmp.gt.f32.partialorder %v443_v5, 0.0  ;;  %vm606_vm4 = vcmp.gt.f32.partialorder %v444_v6, 0.0  ;;  %1282 = vset.pattern.permute.xlu0 %v1305_v7  ;;  %v441_v9 = vld [vmem:[%s1617_s2] sm:$0xff]  ;;  %vm604_vm6 = vcmp.gt.f32.partialorder %v442_v8, 0.0  ;;  %v1306_v14 = vmov 1  }
   0xe   : > { %v449_v1 = vld [vmem:[%s410_s16] sm:$0xf]  ;;  %v609_v10 = vsel %vm605_vm3, 1, %v1305_v7  ;;  %vm603_vm5 = vcmp.gt.f32.partialorder %v441_v9, 0.0  ;;  %v610_v12 = vsel %vm606_vm4, 1, %v1305_v7  ;;  %v608_v13 = vsel %vm604_vm6, 1, %v1305_v7  ;;  %s413_s19 = scalar_lea.vmem %s1619_s4, %s1638_s10  ;;  %s426_s28 = scalar_lea.vmem %s1622_s7, %s1638_s10 }
   0xf   : > { %1267 = vmatprep.subr.msk.bf16.mxu0 %vm470_vm1, %v449_v1  ;;  %v472_v2 = vsel %vm470_vm1, %v449_v1, 0  ;;  %v1292_v4 = vld [vmem:[%s1387_s22] sm:$0xff]   ;;  %618 = vperm.xlu1 %1283, %v609_v10   ;;  %v607_v11 = vsel %vm603_vm5, 1, %v1305_v7  ;;  %v1307_v15 = vmov 2   ;;  %v1308_v16 = vmov 3   ;;  %v1404_v23 = vld [vmem:[%s1387_s22 + $0x8] sm:$0xff]  }
  0x10   : > { %1228 = vmatpush3.bf16.msra.mxu0 %v472_v2  ;;  %1237 = vmatprep.mubr.msk.bf16.mxu1 %vm541_vm2, %v1292_v4  ;;  %s1410_s12 = sshll.u32 %s1638_s10, 3  ;;  %v1188_v38 = vld [vmem:[%s413_s19] ss:$0 sm:$0xff]  ;;  %vm631_vm6 = vcmask 130048  }
  0x11   : > { %612 = vperm.xlu0 %1282, %v607_v11   ;;  %s423_s16 = scalar_lea.vmem %s1621_s6, %s1410_s12  ;;  %s418_s22 = scalar_lea.vmem %s1620_s5, %s1410_s12 }
  0x12   : > { %v1294_v24 = vld [vmem:[%s423_s16] sm:$0xff]   ;;  %s431_s25 = scalar_lea.vmem %s1623_s8, %s1410_s12  ;;  %s435_s12 = scalar_lea.vmem %s1624_s9, %s1176_s13 }
  0x13   : > { %1230 = vmatmul.mubr.msk.bf16.vlgmr.msra.gmra.mxu0 %vm463_vm0, %v1291_v3  ;;  %621 = vperm.xlu1 %1283, %v610_v12  }
  0x14   : > { %1241 = vmatprep.subr.bf16.mxu0 %v1294_v24 }
  0x15   : > { %615 = vperm.xlu0 %1282, %v608_v13   ;;  %1242 = vmatpush3.bf16.msra.mxu0 %v1294_v24 }
  0x17   : > { %1285 = vset.pattern.permute.xlu1 %v1306_v14 }
  0x18   : > { %649 = vperm.xlu1 %1285, %v608_v13  }
  0x19   : > { %1284 = vset.pattern.permute.xlu0 %v1306_v14 }
  0x1a   : > { %646 = vperm.xlu0 %1284, %v607_v11  }
  0x1c   : > { %652 = vperm.xlu1 %1285, %v609_v10  }
  0x1e   : > { %655 = vperm.xlu0 %1284, %v610_v12  }
  0x20   : > { %1286 = vset.pattern.permute.xlu1 %v1307_v15 }
  0x21   : > { %679 = vperm.xlu1 %1286, %v607_v11  }
  0x22   : > { %1287 = vset.pattern.permute.xlu0 %v1307_v15 }
  0x23   : > { %682 = vperm.xlu0 %1287, %v608_v13  }
  0x25   : > { %685 = vperm.xlu1 %1286, %v609_v10  }
  0x27   : > { %1288 = vset.pattern.permute.xlu0 %v1308_v16 }
  0x28   : > { %712 = vperm.xlu0 %1288, %v607_v11  }
  0x29   : > { %688 = vperm.xlu1 %1286, %v610_v12  }
  0x2c   : > { %721 = vperm.xlu0 %1288, %v610_v12  }
  0x2d   : > { %1289 = vset.pattern.permute.xlu1 %v1308_v16 }
  0x2e   : > { %715 = vperm.xlu1 %1289, %v608_v13  }
  0x32   : > { %718 = vperm.xlu1 %1289, %v609_v10  }
  0x8a   : > { %v1416_v25 = vpop.permute.xlu1 %618 }
  0x8b   : > { %vm625_vm7 = vcmp.eq.s32.totalorder %v1416_v25, 1 }
  0x8c   : > { %v1422_v28 = vpop.permute.xlu0 %612 }
  0x8d   : > { %vm1625_vm10 = vcmp.eq.s32.totalorder %v1422_v28, 1 }
  0x8e   : > { %v1418_v26 = vpop.permute.xlu1 %621 }
  0x8f   : > { %vm626_vm8 = vcmp.eq.s32.totalorder %v1418_v26, 1 }
  0x90   : > { %v1426_v30 = vpop.permute.xlu0 %615 }
  0x91   : > { %vm1630_vm11 = vcmp.eq.s32.totalorder %v1426_v30, 1 }
  0x93   : > { %v1420_v27 = vpop.permute.xlu1 %649 }
  0x94   : > { %vm1629_vm12 = vcmp.eq.s32.totalorder %v1420_v27, 1 }
  0x95   : > { %v1430_v32 = vpop.permute.xlu0 %646 }
  0x96   : > { %vm1626_vm14 = vcmp.eq.s32.totalorder %v1430_v32, 1 }
  0x97   : > { %v1424_v29 = vpop.permute.xlu1 %652 }
  0x98   : > { %vm659_vm9 = vcmp.eq.s32.totalorder %v1424_v29, 1 }
  0x99   : > { %v1434_v34 = vpop.permute.xlu0 %655 }
  0x9a   : > { %vm660_vm1 = vcmp.eq.s32.totalorder %v1434_v34, 1 }
  0x9c   : > { %v1428_v31 = vpop.permute.xlu1 %679 }
  0x9d   : > { %vm690_vm0 = vcmp.eq.s32.totalorder %v1428_v31, 1 }
  0x9e   : > { %v1438_v36 = vpop.permute.xlu0 %682 }
  0x9f   : > { %vm1628_vm3 = vcmp.eq.s32.totalorder %v1438_v36, 1 }
  0xa0   : > { %v1432_v33 = vpop.permute.xlu1 %685 }
  0xa1   : > { %vm692_vm13 = vcmp.eq.s32.totalorder %v1432_v33, 1 }
  0xa3   : > { %v1446_v41 = vpop.permute.xlu0 %712 }
  0xa4   : > { %v1436_v35 = vpop.permute.xlu1 %688  ;;  %vm723_vm4 = vcmp.eq.s32.totalorder %v1446_v41, 1 }
  0xa5   : > { %vm693_vm5 = vcmp.eq.s32.totalorder %v1436_v35, 1 }
  0xa7   : > { %v1474_v51 = vpop.permute.xlu0 %721 }
  0xa9   : > { %v1444_v37 = vpop.permute.xlu1 %715 }
  0xad   : > { %v1448_v43 = vpop.permute.xlu1 %718 }
  0xae   : > { %vm725_vm15 = vcmp.eq.s32.totalorder %v1448_v43, 1 }
  0xd3   : > { %v1231_v17 = vpop.f32.mrf.mxu0 }
  0xd5   : > { %v508_v18 = vpop.f32.mrf.mxu0 }
  0xd7   : > { %v1232_v19 = vpop.f32.mrf.mxu0 }
  0xd8   : > { %v524_v20 = vpack.c.bf16 %v1232_v19, %v1231_v17 }
  0xd9   : > { %v511_v21 = vpop.f32.mrf.mxu0 }
  0xda   : > { %v523_v22 = vpack.c.bf16 %v511_v21, %v508_v18  ;;  %1233 = vmatprep.subr.bf16.mxu1 %v524_v20 }
  0xdb   : > { %1234 = vmatpush3.bf16.msra.mxu1 %v524_v20 }
  0xdc   : > { %1235 = vmatprep.subr.bf16.mxu1 %v523_v22 }
  0xdf   : > { %1236 = vmatpush3.bf16.msra.mxu1 %v523_v22 }
  0xe2   : > { %1238 = vmatmul.mubr.msk.bf16.vlgmr.msra.gmra.mxu1 %vm541_vm2, %v1404_v23 }
  0xe3   : > { %1251 = vmatprep.mubr.msk.bf16.mxu1 %vm541_vm2, %v1292_v4 }
 0x1a2   : > { %v1239_v39 = vpop.f32.mrf.mxu1 }
 0x1a3   : > { %v591_v40 = vadd.f32 %v1239_v39, %v1188_v38 }
 0x1a4   : > { %v582_v42 = vpop.f32.mrf.mxu1 }
 0x1a5   : > { %v1451_v44 = vmax.f32 %v591_v40, 0.0  ;;  %v583_v45 = vadd.f32 %v1188_v38, %v582_v42 }
 0x1a6   : > { %v1240_v46 = vpop.f32.mrf.mxu1 }
 0x1a7   : > { %v1460_v47 = vmax.f32 %v583_v45, 0.0  ;;  %v629_v49 = vsel %vm625_vm7, %v1451_v44, 0.0  ;;  %v663_v50 = vsel %vm659_vm9, %v1451_v44, 0.0  ;;  %v696_v52 = vsel %vm692_vm13, %v1451_v44, 0.0 }
 0x1a8   : > { %v585_v48 = vpop.f32.mrf.mxu1  ;;  %v729_v55 = vsel %vm725_vm15, %v1451_v44, 0.0  ;;  %v594_v58 = vadd.f32 %v1240_v46, %v1188_v38  ;;  %v634_v60 = vsel %vm631_vm6, %v629_v49, -inf  ;;  %v667_v61 = vsel %vm631_vm6, %v663_v50, -inf }
 0x1a9   : > { %v627_v53 = vsel %vm1625_vm10, %v1460_v47, 0.0  ;;  %v661_v54 = vsel %vm1626_vm14, %v1460_v47, 0.0  ;;  %v694_v56 = vsel %vm690_vm0, %v1460_v47, 0.0  ;;  %v727_v57 = vsel %vm723_vm4, %v1460_v47, 0.0 }
 0x1aa   : > { %v586_v59 = vadd.f32 %v1188_v38, %v585_v48  ;;  %vm1627_vm10 = vcmp.eq.s32.totalorder %v1444_v37, 1  ;;  %vm726_vm14 = vcmp.eq.s32.totalorder %v1474_v51, 1  ;;  %v700_v62 = vsel %vm631_vm6, %v696_v52, -inf }
 0x1ab   : > { %v733_v63 = vsel %vm631_vm6, %v729_v55, -inf  ;;  %v600_v0 = vmax.f32 %v594_v58, 0.0  ;;  %v632_v2 = vsel %vm631_vm6, %v627_v53, -inf  ;;  %v665_v3 = vsel %vm631_vm6, %v661_v54, -inf }
 0x1ac   : > { %v598_v1 = vmax.f32 %v586_v59, 0.0  ;;  %v698_v4 = vsel %vm631_vm6, %v694_v56, -inf  ;;  %v731_v5 = vsel %vm631_vm6, %v727_v57, -inf }
 0x1ad   : > { %v630_v6 = vsel %vm626_vm8, %v600_v0, 0.0  ;;  %v664_v7 = vsel %vm660_vm1, %v600_v0, 0.0  ;;  %v697_v8 = vsel %vm693_vm5, %v600_v0, 0.0  ;;  %v730_v21 = vsel %vm726_vm14, %v600_v0, 0.0 }
 0x1ae   : > { %v628_v9 = vsel %vm1630_vm11, %v598_v1, 0.0  ;;  %v635_v10 = vsel %vm631_vm6, %v630_v6, -inf  ;;  %v668_v11 = vsel %vm631_vm6, %v664_v7, -inf  ;;  %v701_v12 = vsel %vm631_vm6, %v697_v8, -inf }
 0x1af   : > { %v633_v13 = vsel %vm631_vm6, %v628_v9, -inf  ;;  %v637_v14 = vmax.f32 %v634_v60, %v635_v10  ;;  %v670_v15 = vmax.f32 %v667_v61, %v668_v11  ;;  %v703_v16 = vmax.f32 %v700_v62, %v701_v12 }
 0x1b0   : > { %v636_v17 = vmax.f32 %v632_v2, %v633_v13  ;;  %v662_v18 = vsel %vm1629_vm12, %v598_v1, 0.0  ;;  %v695_v19 = vsel %vm1628_vm3, %v598_v1, 0.0  ;;  %v728_v20 = vsel %vm1627_vm10, %v598_v1, 0.0 }
 0x1b1   : > { %v666_v24 = vsel %vm631_vm6, %v662_v18, -inf  ;;  %v699_v38 = vsel %vm631_vm6, %v695_v19, -inf  ;;  %v732_v39 = vsel %vm631_vm6, %v728_v20, -inf  ;;  %v734_v45 = vsel %vm631_vm6, %v730_v21, -inf }
 0x1b2   : > { %v638_v22 = vmax.f32 %v636_v17, %v637_v14  ;;  %v669_v40 = vmax.f32 %v665_v3, %v666_v24  ;;  %v702_v42 = vmax.f32 %v698_v4, %v699_v38  ;;  %v735_v46 = vmax.f32 %v731_v5, %v732_v39  ;;  %v1295_v24 = vld [vmem:[%s418_s22] sm:$0xff]  }
 0x1b3   : > { %v736_v49 = vmax.f32 %v733_v63, %v734_v45  ;;  %v601_v50 = vpack.c.bf16 %v598_v1, %v1460_v47  ;;  %v602_v54 = vpack.c.bf16 %v600_v0, %v1451_v44  ;;  %vm744_vm10 = vcmask 1040384   ;;  %v1296_v39 = vld [vmem:[%s431_s25] sm:$0xff]  }
 0x1b4   : > { %v639_v48 = vrot.slane %v638_v22, 4  ;;  %v671_v52 = vmax.f32 %v669_v40, %v670_v15  ;;  %v704_v53 = vmax.f32 %v702_v42, %v703_v16  ;;  %vm746_vm3 = vcmask 1041408   ;;  %v1196_v40 = vld [vmem:[%s426_s28] ss:$0 sm:$0xff] }
 0x1b5   : > { %v737_v56 = vmax.f32 %v735_v46, %v736_v49  ;;  %1243 = vmatprep.mubr.msk.bf16.mxu0 %vm631_vm6, %v601_v50  ;;  %vm748_vm12 = vcmask 1042432   ;;  %v1309_v16 = vmov 0.0   ;;  %vm1310_vm11 = vmmov 0  }
 0x1b6   : > { %v640_v55 = vmax.f32 %v638_v22, %v639_v48  ;;  %v672_v57 = vrot.slane %v671_v52, 4  ;;  %v705_v58 = vrot.slane %v704_v53, 4  ;;  %1244 = vmatmul.mubr.msk.bf16.vlgmr.msra.gmra.mxu0 %vm631_vm6, %v602_v54  ;;  %1255 = vmatprep.subr.bf16.mxu0 %v1309_v16 }
 0x1b7   : > { %v738_v60 = vrot.slane %v737_v56, 4  ;;  %1257 = vmatprep.mubr.msk.bf16.mxu0 %vm1310_vm11, %v1309_v16  ;;  %1256 = vmatpush3.bf16.msra.mxu0 %v1296_v39 }
 0x1b8   : > { %v641_v59 = vrot.slane %v640_v55, 2  ;;  %v673_v61 = vmax.f32 %v671_v52, %v672_v57  ;;  %v706_v62 = vmax.f32 %v704_v53, %v705_v58 }
 0x1b9   : > { %v739_v63 = vmax.f32 %v737_v56, %v738_v60 }
 0x1ba   : > { %v642_v2 = vmax.f32 %v640_v55, %v641_v59  ;;  %v674_v3 = vrot.slane %v673_v61, 2  ;;  %v707_v47 = vrot.slane %v706_v62, 2 }
 0x1bb   : > { %v740_v1 = vrot.slane %v739_v63, 2 }
 0x1bc   : > { %v643_v4 = vrot.slane %v642_v2, 1  ;;  %v675_v5 = vmax.f32 %v673_v61, %v674_v3  ;;  %v708_v44 = vmax.f32 %v706_v62, %v707_v47 }
 0x1bd   : > { %v741_v0 = vmax.f32 %v739_v63, %v740_v1 }
 0x1be   : > { %v644_v6 = vmax.f32 %v642_v2, %v643_v4  ;;  %v676_v7 = vrot.slane %v675_v5, 1  ;;  %v709_v8 = vrot.slane %v708_v44, 1 }
 0x1bf   : > { %v742_v9 = vrot.slane %v741_v0, 1 }
 0x1c0   : > { %v677_v10 = vmax.f32 %v675_v5, %v676_v7  ;;  %v710_v11 = vmax.f32 %v708_v44, %v709_v8 }
 0x1c1   : > { %v743_v12 = vmax.f32 %v741_v0, %v742_v9 }
 0x1c2   : > { %v745_v13 = vsel %vm744_vm10, %v644_v6, %v677_v10 }
 0x1c3   : > { %v747_v14 = vsel %vm746_vm3, %v745_v13, %v710_v11 }
 0x1c4   : > { %v749_v15 = vsel %vm748_vm12, %v747_v14, %v743_v12 }
 0x1c5   : > { %v750_v38 = vpack.c.bf16 %v749_v15, %v749_v15 }
 0x276   : > { %v1245_v17 = vpop.f32.mrf.mxu0 }
 0x278   : > { %v802_v18 = vpop.f32.mrf.mxu0 }
 0x27a   : > { %v1246_v19 = vpop.f32.mrf.mxu0 }
 0x27b   : > { %v818_v20 = vpack.c.bf16 %v1246_v19, %v1245_v17 }
 0x27c   : > { %v805_v21 = vpop.f32.mrf.mxu0 }
 0x27d   : > { %v817_v22 = vpack.c.bf16 %v805_v21, %v802_v18  ;;  %1247 = vmatprep.subr.bf16.mxu1 %v818_v20 }
 0x27e   : > { %1248 = vmatpush3.bf16.msra.mxu1 %v818_v20 }
 0x27f   : > { %1249 = vmatprep.subr.bf16.mxu1 %v817_v22 }
 0x282   : > { %1250 = vmatpush3.bf16.msra.mxu1 %v817_v22 }
 0x283   : > { %1261 = vmatprep.subr.bf16.mxu1 %v1309_v16 }
 0x285   : > { %1252 = vmatmul.mubr.msk.bf16.vlgmr.msra.gmra.mxu1 %vm541_vm2, %v1404_v23  ;;  %vm1631_vm2 = vcmp.eq.s32.totalorder %v1422_v28, 1 }
 0x286   : > { %1262 = vmatpush3.bf16.msra.mxu1 %v1295_v24  ;;  %1263 = vmatprep.mubr.msk.bf16.mxu1 %vm1310_vm11, %v1309_v16  ;;  %vm1632_vm11 = vcmp.eq.s32.totalorder %v1430_v32, 1 }
 0x28d   : > { %1264 = vmatmul.mubr.msk.bf16.vlgmr.msra.gmra.mxu1 %vm631_vm6, %v750_v38 }
 0x345   : > { %v1253_v42 = vpop.f32.mrf.mxu1 }
 0x346   : > { %v868_v45 = vadd.f32 %v1253_v42, %v1196_v40 }
 0x347   : > { %v859_v23 = vpop.f32.mrf.mxu1 }
 0x348   : > { %v876_v46 = vmax.f32 %v868_v45, 0.0  ;;  %v860_v48 = vadd.f32 %v1196_v40, %v859_v23 }
 0x349   : > { %v1254_v49 = vpop.f32.mrf.mxu1 }
 0x34a   : > { %v880_v52 = vsel %vm625_vm7, %v876_v46, 0.0  ;;  %v897_v53 = vsel %vm659_vm9, %v876_v46, 0.0  ;;  %v874_v54 = vmax.f32 %v860_v48, 0.0  ;;  %v871_v55 = vadd.f32 %v1254_v49, %v1196_v40 }
 0x34b   : > { %v862_v50 = vpop.f32.mrf.mxu1  ;;  %v914_v56 = vsel %vm692_vm13, %v876_v46, 0.0  ;;  %v931_v57 = vsel %vm725_vm15, %v876_v46, 0.0  ;;  %v884_v33 = vsel %vm631_vm6, %v880_v52, -inf  ;;  %v901_v43 = vsel %vm631_vm6, %v897_v53, -inf }
 0x34c   : > { %v863_v58 = vadd.f32 %v1196_v40, %v862_v50  ;;  %v878_v60 = vsel %vm1631_vm2, %v874_v54, 0.0  ;;  %v895_v25 = vsel %vm1632_vm11, %v874_v54, 0.0  ;;  %v912_v29 = vsel %vm690_vm0, %v874_v54, 0.0 }
 0x34d   : > { %v1560_v59 = vpop.f32.mrf.mxu1  ;;  %v929_v61 = vsel %vm723_vm4, %v874_v54, 0.0  ;;  %v918_v2 = vsel %vm631_vm6, %v914_v56, -inf  ;;  %v935_v63 = vsel %vm631_vm6, %v931_v57, -inf  ;;  %v882_v28 = vsel %vm631_vm6, %v878_v60, -inf }
 0x34e   : > { %v877_v3 = vmax.f32 %v871_v55, 0.0  ;;  %v899_v32 = vsel %vm631_vm6, %v895_v25, -inf  ;;  %v916_v31 = vsel %vm631_vm6, %v912_v29, -inf  ;;  %v933_v47 = vsel %vm631_vm6, %v929_v61, -inf }
 0x34f   : > { %v1265_v62 = vpop.f32.mrf.mxu1  ;;  %v875_v41 = vmax.f32 %v863_v58, 0.0  ;;  %vm1633_vm7 = vcmp.eq.s32.totalorder %v1426_v30, 1  ;;  %vm1635_vm9 = vcmp.eq.s32.totalorder %v1438_v36, 1  ;;  %vm1636_vm13 = vcmp.eq.s32.totalorder %v1444_v37, 1 }
 0x350   : > { %v881_v4 = vsel %vm626_vm8, %v877_v3, 0.0  ;;  %v898_v5 = vsel %vm660_vm1, %v877_v3, 0.0  ;;  %v915_v44 = vsel %vm693_vm5, %v877_v3, 0.0  ;;  %v932_v0 = vsel %vm726_vm14, %v877_v3, 0.0 }
 0x351   : > { %v1045_v1 = vpop.f32.mrf.mxu1  ;;  %v885_v6 = vsel %vm631_vm6, %v881_v4, -inf  ;;  %v902_v7 = vsel %vm631_vm6, %v898_v5, -inf  ;;  %v919_v8 = vsel %vm631_vm6, %v915_v44, -inf  ;;  %v936_v9 = vsel %vm631_vm6, %v932_v0, -inf }
 0x352   : > { %v887_v26 = vmax.f32 %v884_v33, %v885_v6  ;;  %v904_v11 = vmax.f32 %v901_v43, %v902_v7  ;;  %v921_v12 = vmax.f32 %v918_v2, %v919_v8  ;;  %v938_v34 = vmax.f32 %v935_v63, %v936_v9 }
 0x353   : > { %v1266_v10 = vpop.f32.mrf.mxu1  ;;  %v879_v35 = vsel %vm1633_vm7, %v875_v41, 0.0  ;;  %vm1634_vm8 = vcmp.eq.s32.totalorder %v1420_v27, 1  ;;  %v913_v13 = vsel %vm1635_vm9, %v875_v41, 0.0  ;;  %v930_v14 = vsel %vm1636_vm13, %v875_v41, 0.0 }
 0x354   : > { %v896_v51 = vsel %vm1634_vm8, %v875_v41, 0.0  ;;  %v883_v15 = vsel %vm631_vm6, %v879_v35, -inf  ;;  %v917_v17 = vsel %vm631_vm6, %v913_v13, -inf  ;;  %v934_v18 = vsel %vm631_vm6, %v930_v14, -inf }
 0x355   : > { %v900_v16 = vsel %vm631_vm6, %v896_v51, -inf  ;;  %v886_v19 = vmax.f32 %v882_v28, %v883_v15  ;;  %v920_v20 = vmax.f32 %v916_v31, %v917_v17  ;;  %v937_v21 = vmax.f32 %v933_v47, %v934_v18 }
 0x356   : > { %v903_v30 = vmax.f32 %v899_v32, %v900_v16  ;;  %vm1048_vm14 = vcmask 257024  }
 0x357   : > { %v888_v27 = vmax.f32 %v886_v19, %v887_v26  ;;  %v922_v24 = vmax.f32 %v920_v20, %v921_v12  ;;  %v939_v36 = vmax.f32 %v937_v21, %v938_v34 }
 0x358   : > { %v905_v22 = vmax.f32 %v903_v30, %v904_v11 }
 0x359   : > { %v889_v38 = vrot.slane %v888_v27, 4  ;;  %v923_v37 = vrot.slane %v922_v24, 4  ;;  %v940_v40 = vrot.slane %v939_v36, 4 }
 0x35a   : > { %v906_v39 = vrot.slane %v905_v22, 4 }
 0x35b   : > { %v890_v42 = vmax.f32 %v888_v27, %v889_v38  ;;  %v924_v23 = vmax.f32 %v922_v24, %v923_v37  ;;  %v941_v46 = vmax.f32 %v939_v36, %v940_v40 }
 0x35c   : > { %v907_v45 = vmax.f32 %v905_v22, %v906_v39 }
 0x35d   : > { %v891_v48 = vrot.slane %v890_v42, 2  ;;  %v925_v50 = vrot.slane %v924_v23, 2  ;;  %v942_v52 = vrot.slane %v941_v46, 2 }
 0x35e   : > { %v908_v49 = vrot.slane %v907_v45, 2 }
 0x35f   : > { %v892_v53 = vmax.f32 %v890_v42, %v891_v48  ;;  %v926_v55 = vmax.f32 %v924_v23, %v925_v50  ;;  %v943_v56 = vmax.f32 %v941_v46, %v942_v52 }
 0x360   : > { %v909_v54 = vmax.f32 %v907_v45, %v908_v49 }
 0x361   : > { %v893_v57 = vrot.slane %v892_v53, 1  ;;  %v927_v60 = vrot.slane %v926_v55, 1  ;;  %v944_v25 = vrot.slane %v943_v56, 1 }
 0x362   : > { %v910_v58 = vrot.slane %v909_v54, 1 }
 0x363   : > { %v894_v29 = vmax.f32 %v892_v53, %v893_v57  ;;  %v928_v33 = vmax.f32 %v926_v55, %v927_v60  ;;  %v945_v43 = vmax.f32 %v943_v56, %v944_v25 }
 0x364   : > { %v911_v61 = vmax.f32 %v909_v54, %v910_v58 }
 0x366   : > { %v946_v62 = vsel %vm744_vm10, %v894_v29, %v911_v61 }
 0x367   : > { %v947_v2 = vsel %vm746_vm3, %v946_v62, %v928_v33 }
 0x368   : > { %v948_v63 = vsel %vm748_vm12, %v947_v2, %v945_v43 }
 0x369   : > { %v949_v28 = vpack.c.bf16 %v948_v63, %v948_v63 }
 0x36b   : > { %1258 = vmatmul.mubr.msk.bf16.vlgmr.msra.gmra.mxu0 %vm631_vm6, %v949_v28 }
 0x42b   : > { %v993_v3 = vpop.f32.mrf.mxu0 }
 0x42c   : > { %v1043_v32 = vadd.f32 %v1560_v59, %v993_v3 }
 0x42d   : > { %v1259_v31 = vpop.f32.mrf.mxu0 }
 0x42e   : > { %1049 = vst.msk [vmem:[%s435_s12] sm:$0xf] %vm1048_vm14, %v1043_v32 }
 0x42f   : > { %v996_v47 = vpop.f32.mrf.mxu0 }
 0x431   : > { %v1260_v41 = vpop.f32.mrf.mxu0 }
 0x432 PF: > { %s19_s30 = sadd.s32 1, %s1303_s30  }
 0x433   : > { %p16_p4 = scmp.ge.s32.totalorder %s19_s30, 4  }
 0x435   :  { %18 = sbr.rel (!%p16_p4) target bundleno = 1 (0x1), region = 104 }

</bundles_post_ra>
